<compile_context>
chip_gen: v5e
topology: v5e:2x2
jax: 0.10.0
libtpu: 0.0.40
codegen_flags: <defaults>
</compile_context>

<pallas_src>
from typing import NamedTuple

import jax
import jax.numpy as jnp
from jax import lax
from jax.experimental import pallas as pl
from jax.experimental.pallas import tpu as pltpu

_MIB = 1024 * 1024


class Dimensions3d(NamedTuple):
    depth: int
    height: int
    width: int

    def divisible_by(self, other: "Dimensions3d") -> bool:
        return (self.depth % other.depth == 0
                and self.height % other.height == 0
                and self.width % other.width == 0)


def _vmem_capacity_bytes() -> int:
    """Physical VMEM of the attached TPU; conservative (v7x-sized) fallback."""
    try:
        cap = int(pltpu.get_tpu_info().vmem_capacity_bytes)
        if cap > 0:
            return cap
    except Exception:
        pass
    return 64 * _MIB


def _pick_tile(n: int, candidates) -> int:
    for c in candidates:
        if n >= c and n % c == 0:
            return c
    return n


def _choose_depth_group(d: int, kd: int, hw: int) -> int:
    """Smallest number of depth-slabs per grid step such that the flattened
    spatial output block (g*kd*H*W) is 128-lane aligned (or the full D*H*W),
    keeping the output BlockSpec (8,128)-legal."""
    for g in range(1, d + 1):
        if d % g == 0 and ((g * kd * hw) % 128 == 0 or g == d):
            return g
    return d


def _choose_channel_block(C, slab_elems, itemsize, vmem_cap, outer_steps):
    """Largest channel block (full C, or a 128-multiple dividing C) whose
    per-step working set (2x in + 2x out + 1x scratch, all slab_elems*c bytes)
    fits the VMEM budget; optionally split further so the megacore gets >= 8
    pipeline steps while blocks stay >= 1 MiB."""
    budget = int(0.45 * vmem_cap)
    cands = [C] + [c for c in (512, 256, 128) if c < C and C % c == 0]
    c_blk = cands[-1]
    for c in cands:
        if 5 * slab_elems * c * itemsize <= budget:
            c_blk = c
            break
    while outer_steps * (C // c_blk) < 8:
        smaller = [c for c in cands
                   if c < c_blk and slab_elems * c * itemsize >= _MIB]
        if not smaller:
            break
        c_blk = smaller[0]
    return c_blk


def _make_window_reverse_kernel(g, h, w, kd, kh, kw, c_blk, dtype, ts, tc,
                                unroll_limit=64):
    """Fused kernel: un-window into a channels-last VMEM scratch (lane dim =
    channels), then emit the channels-first output block via lane-dense tiled
    transposes (lane dim = flattened H*W), all within one grid step."""
    W = w * kw
    HW = h * kh * W                   # spatial extent of one output depth slice
    n_planes = g * kd                 # output depth slices per grid step
    n_rows = n_planes * h * kh        # phase-1 row statements
    n_s, n_c = HW // ts, c_blk // tc
    n_tiles = n_planes * n_s * n_c    # phase-2 transpose statements

    # One collapsed (w, kw, C)->(W, C) store per row whenever the flatten is
    # layout-trivial (kw fills whole sublane tiles); otherwise per-window
    # copies.  Post-fusion the per-window path only touches VMEM scratch, so
    # the HBM output stores stay lane-dense & unmasked either way.
    sublane = max(1, 32 // jnp.dtype(dtype).itemsize)
    collapse = (kw % sublane == 0)

    def assemble_row(x_ref, scratch_ref, gi, kdi, hi, khi):
        plane = gi * kd + kdi
        win0 = (gi * h + hi) * w              # first window of this output row
        src = (kdi * kh + khi) * kw           # offset inside every window
        dst = (hi * kh + khi) * W             # row offset inside the slice
        if collapse:
            slab = x_ref[0, pl.ds(win0, w), pl.ds(src, kw), :]   # (w, kw, c)
            scratch_ref[plane, pl.ds(dst, W), :] = slab.reshape(W, c_blk)
        else:
            for wi in range(w):
                scratch_ref[plane, pl.ds(dst + wi * kw, kw), :] = (
                    x_ref[0, win0 + wi, pl.ds(src, kw), :])

    def transpose_tile(scratch_ref, o_ref, plane, si, ci):
        tile = scratch_ref[plane, pl.ds(si, ts), pl.ds(ci, tc)]  # (ts, tc)
        o_ref[0, pl.ds(ci, tc), pl.ds(plane * HW + si, ts)] = tile.T

    def kernel(x_ref, o_ref, scratch_ref):
        # x_ref:       (1, g*h*w, kd*kh*kw, c_blk)   -- all windows of g slabs
        # o_ref:       (1, c_blk, g*kd*H*W)          -- channels-first output
        # scratch_ref: (g*kd, H*W, c_blk)            -- channels-last staging

        # ---- Phase 1: windows -> channels-last slab in VMEM scratch. ----
        if n_rows <= unroll_limit:
            for gi in range(g):
                for kdi in range(kd):
                    for hi in range(h):
                        for khi in range(kh):
                            assemble_row(x_ref, scratch_ref, gi, kdi, hi, khi)
        else:
            def p1_body(t, carry):
                hi = t % h
                kdi = (t // h) % kd
                gi = t // (h * kd)
                for khi in range(kh):         # short innermost loop unrolled
                    assemble_row(x_ref, scratch_ref, gi, kdi, hi, khi)
                return carry
            lax.fori_loop(0, n_planes * h, p1_body, 0)

        # ---- Phase 2: lane-dense tiled transpose (H*W on the lane axis). ----
        if n_tiles <= unroll_limit:
            for plane in range(n_planes):
                for ci in range(n_c):
                    for si in range(n_s):
                        transpose_tile(scratch_ref, o_ref,
                                       plane, si * ts, ci * tc)
        else:
            def p2_body(t, carry):
                si = t % n_s
                ci = (t // n_s) % n_c
                plane = t // (n_s * n_c)
                transpose_tile(scratch_ref, o_ref, plane, si * ts, ci * tc)
                return carry
            lax.fori_loop(0, n_tiles, p2_body, 0)

    return kernel


def window_reverse_3d(x, volume_size: Dimensions3d, kernel_size: Dimensions3d):
    """Pallas implementation of WindowReverse3d.forward.

    x: (B, d*h*w, kd*kh*kw, C)  ->  (B, C, D, H, W)
    """
    assert x.ndim == 4, f"Require a sequence (BWLE), received: {x.shape}"
    assert volume_size.divisible_by(kernel_size), (
        f"Not all dimensions are divisible by kernel: {volume_size} / {kernel_size}")

    D, H, W = volume_size
    kd, kh, kw = kernel_size
    d, h, w = D // kd, H // kh, W // kw
    B, NW, WL, C = x.shape
    assert NW == d * h * w, f"Expected {d * h * w} windows, got {NW}"
    assert WL == kd * kh * kw, f"Expected window length {kd * kh * kw}, got {WL}"
    HW = H * W
    S = D * HW
    itemsize = jnp.dtype(x.dtype).itemsize

    # Generation-aware VMEM budget: never request physical VMEM; leave ~25%
    # headroom for compiler scratch (≈48 MiB on v7x, ≈96 MiB on v5e/v6e).
    vmem_cap = int(0.75 * _vmem_capacity_bytes())

    g = _choose_depth_group(d, kd, HW)          # depth slabs per grid step
    n_d = d // g
    slab_elems = g * kd * HW                    # spatial elements per block
    c_blk = _choose_channel_block(C, slab_elems, itemsize, vmem_cap, B * n_d)
    n_ch = C // c_blk
    S_blk = g * kd * HW                         # flat spatial width of a block

    ts = _pick_tile(HW, (512, 256, 128))        # transpose tile, spatial side
    tc = _pick_tile(c_blk, (256, 128))          # transpose tile, channel side

    kernel = _make_window_reverse_kernel(g, h, w, kd, kh, kw, c_blk,
                                         x.dtype, ts, tc)

    blk_bytes = slab_elems * c_blk * itemsize   # in == out == scratch block
    vmem_request = int(min(vmem_cap, max(16 * _MIB, 1.5 * 5 * blk_bytes)))

    out_flat = pl.pallas_call(
        kernel,
        out_shape=jax.ShapeDtypeStruct((B, C, S), x.dtype),
        grid_spec=pltpu.PrefetchScalarGridSpec(
            num_scalar_prefetch=0,
            grid=(B, n_ch, n_d),
            in_specs=[pl.BlockSpec((1, g * h * w, WL, c_blk),
                                   lambda b, cj, di: (b, di, 0, cj))],
            out_specs=pl.BlockSpec((1, c_blk, S_blk),
                                   lambda b, cj, di: (b, cj, di)),
            scratch_shapes=[pltpu.VMEM((g * kd, HW, c_blk), x.dtype)],
        ),
        compiler_params=pltpu.CompilerParams(
            dimension_semantics=("parallel", "parallel", "parallel"),
            vmem_limit_bytes=vmem_request),
    )(x)

    # Metadata-only reshape to the exact PyTorch output shape (NCDHW).
    return out_flat.reshape(B, C, D, H, W)


def _reference(x, volume_size: Dimensions3d, kernel_size: Dimensions3d):
    """Pure-JAX reference of
    rearrange('b (d h w) (kd kh kw) c -> b c (d kd) (h kh) (w kw)')."""
    B, _, _, C = x.shape
    D, H, W = volume_size
    kd, kh, kw = kernel_size
    d, h, w = D // kd, H // kh, W // kw
    return (x.reshape(B, d, h, w, kd, kh, kw, C)
            .transpose(0, 7, 1, 4, 2, 5, 3, 6)
            .reshape(B, C, D, H, W))


if __name__ == "__main__":
    configs = [
        # (volume, kernel, B, C)
        # Config 0: kw fills a sublane tile -> collapsed (W, C)-row path.
        (Dimensions3d(depth=4, height=8, width=16),
         Dimensions3d(depth=2, height=4, width=8), 2, 128),
        # Config 1: kw < sublane tile and C < 128 -> per-window scratch path;
        # the fused transpose keeps the HBM output stores lane-dense anyway.
        (Dimensions3d(depth=4, height=8, width=16),
         Dimensions3d(depth=2, height=4, width=4), 2, 64),
    ]

    key = jax.random.PRNGKey(0)
    for volume_size, kernel_size, B, C in configs:
        d = volume_size.depth // kernel_size.depth
        h = volume_size.height // kernel_size.height
        w = volume_size.width // kernel_size.width
        NW = d * h * w
        WL = kernel_size.depth * kernel_size.height * kernel_size.width

        key, sub = jax.random.split(key)
        x = jax.random.normal(sub, (B, NW, WL, C), dtype=jnp.float32)

        out = jax.block_until_ready(
            window_reverse_3d(x, volume_size, kernel_size))
        ref = _reference(x, volume_size, kernel_size)

        assert out.shape == ref.shape, (out.shape, ref.shape)
        assert out.dtype == x.dtype
        assert jnp.array_equal(out, ref), "Pallas output mismatch vs reference"

    print("KERNEL_OK")
</pallas_src>

<mosaic_0001>
module attributes {stable_mosaic.version = 11 : i64} {
  func.func @kernel(%arg0: i32, %arg1: i32, %arg2: i32, %arg3: memref<1x4x64x128xf32, #tpu.memory_space<vmem>>, %arg4: memref<1x128x256xf32, #tpu.memory_space<vmem>>, %arg5: memref<2x128x128xf32, #tpu.memory_space<vmem>>) attributes {dimension_semantics = [#tpu.dimension_semantics<parallel>, #tpu.dimension_semantics<parallel>, #tpu.dimension_semantics<parallel>], iteration_bounds = array<i64: 2, 1, 2>, scalar_prefetch = 0 : i64, scratch_operands = 1 : i64, tpu.core_type = #tpu.core_type<tc>, window_params = [{transform_indices = @transform_0, window_bounds = array<i64: 1, 4, 64, 128>}, {transform_indices = @transform_1, window_bounds = array<i64: 1, 128, 256>}]} {
    %c0 = arith.constant 0 : index
    %c0_0 = arith.constant 0 : index
    %c0_1 = arith.constant 0 : index
    %c0_2 = arith.constant 0 : index
    %0 = vector.load %arg3[%c0, %c0_0, %c0_1, %c0_2] : memref<1x4x64x128xf32, #tpu.memory_space<vmem>>, vector<1x2x8x128xf32>
    %1 = vector.shape_cast %0 : vector<1x2x8x128xf32> to vector<2x8x128xf32>
    %2 = vector.shape_cast %1 : vector<2x8x128xf32> to vector<16x128xf32>
    %c0_3 = arith.constant 0 : index
    %c0_4 = arith.constant 0 : index
    %c0_5 = arith.constant 0 : index
    %3 = vector.load %arg5[%c0_3, %c0_4, %c0_5] : memref<2x128x128xf32, #tpu.memory_space<vmem>>, vector<1x16x128xf32>
    %4 = vector.shape_cast %3 : vector<1x16x128xf32> to vector<16x128xf32>
    %5 = vector.shape_cast %2 : vector<16x128xf32> to vector<1x16x128xf32>
    tpu.vector_store %arg5[%c0_3, %c0_4, %c0_5], %5 {strides = array<i32>} : memref<2x128x128xf32, #tpu.memory_space<vmem>>, vector<1x16x128xf32>,
    %c0_6 = arith.constant 0 : index
    %c0_7 = arith.constant 0 : index
    %c8 = arith.constant 8 : index
    %c0_8 = arith.constant 0 : index
    %6 = vector.load %arg3[%c0_6, %c0_7, %c8, %c0_8] : memref<1x4x64x128xf32, #tpu.memory_space<vmem>>, vector<1x2x8x128xf32>
    %7 = vector.shape_cast %6 : vector<1x2x8x128xf32> to vector<2x8x128xf32>
    %8 = vector.shape_cast %7 : vector<2x8x128xf32> to vector<16x128xf32>
    %c0_9 = arith.constant 0 : index
    %c16 = arith.constant 16 : index
    %c0_10 = arith.constant 0 : index
    %9 = vector.load %arg5[%c0_9, %c16, %c0_10] : memref<2x128x128xf32, #tpu.memory_space<vmem>>, vector<1x16x128xf32>
    %10 = vector.shape_cast %9 : vector<1x16x128xf32> to vector<16x128xf32>
    %11 = vector.shape_cast %8 : vector<16x128xf32> to vector<1x16x128xf32>
    tpu.vector_store %arg5[%c0_9, %c16, %c0_10], %11 {strides = array<i32>} : memref<2x128x128xf32, #tpu.memory_space<vmem>>, vector<1x16x128xf32>,
    %c0_11 = arith.constant 0 : index
    %c0_12 = arith.constant 0 : index
    %c16_13 = arith.constant 16 : index
    %c0_14 = arith.constant 0 : index
    %12 = vector.load %arg3[%c0_11, %c0_12, %c16_13, %c0_14] : memref<1x4x64x128xf32, #tpu.memory_space<vmem>>, vector<1x2x8x128xf32>
    %13 = vector.shape_cast %12 : vector<1x2x8x128xf32> to vector<2x8x128xf32>
    %14 = vector.shape_cast %13 : vector<2x8x128xf32> to vector<16x128xf32>
    %c0_15 = arith.constant 0 : index
    %c32 = arith.constant 32 : index
    %c0_16 = arith.constant 0 : index
    %15 = vector.load %arg5[%c0_15, %c32, %c0_16] : memref<2x128x128xf32, #tpu.memory_space<vmem>>, vector<1x16x128xf32>
    %16 = vector.shape_cast %15 : vector<1x16x128xf32> to vector<16x128xf32>
    %17 = vector.shape_cast %14 : vector<16x128xf32> to vector<1x16x128xf32>
    tpu.vector_store %arg5[%c0_15, %c32, %c0_16], %17 {strides = array<i32>} : memref<2x128x128xf32, #tpu.memory_space<vmem>>, vector<1x16x128xf32>,
    %c0_17 = arith.constant 0 : index
    %c0_18 = arith.constant 0 : index
    %c24 = arith.constant 24 : index
    %c0_19 = arith.constant 0 : index
    %18 = vector.load %arg3[%c0_17, %c0_18, %c24, %c0_19] : memref<1x4x64x128xf32, #tpu.memory_space<vmem>>, vector<1x2x8x128xf32>
    %19 = vector.shape_cast %18 : vector<1x2x8x128xf32> to vector<2x8x128xf32>
    %20 = vector.shape_cast %19 : vector<2x8x128xf32> to vector<16x128xf32>
    %c0_20 = arith.constant 0 : index
    %c48 = arith.constant 48 : index
    %c0_21 = arith.constant 0 : index
    %21 = vector.load %arg5[%c0_20, %c48, %c0_21] : memref<2x128x128xf32, #tpu.memory_space<vmem>>, vector<1x16x128xf32>
    %22 = vector.shape_cast %21 : vector<1x16x128xf32> to vector<16x128xf32>
    %23 = vector.shape_cast %20 : vector<16x128xf32> to vector<1x16x128xf32>
    tpu.vector_store %arg5[%c0_20, %c48, %c0_21], %23 {strides = array<i32>} : memref<2x128x128xf32, #tpu.memory_space<vmem>>, vector<1x16x128xf32>,
    %c0_22 = arith.constant 0 : index
    %c2 = arith.constant 2 : index
    %c0_23 = arith.constant 0 : index
    %c0_24 = arith.constant 0 : index
    %24 = vector.load %arg3[%c0_22, %c2, %c0_23, %c0_24] : memref<1x4x64x128xf32, #tpu.memory_space<vmem>>, vector<1x2x8x128xf32>
    %25 = vector.shape_cast %24 : vector<1x2x8x128xf32> to vector<2x8x128xf32>
    %26 = vector.shape_cast %25 : vector<2x8x128xf32> to vector<16x128xf32>
    %c0_25 = arith.constant 0 : index
    %c64 = arith.constant 64 : index
    %c0_26 = arith.constant 0 : index
    %27 = vector.load %arg5[%c0_25, %c64, %c0_26] : memref<2x128x128xf32, #tpu.memory_space<vmem>>, vector<1x16x128xf32>
    %28 = vector.shape_cast %27 : vector<1x16x128xf32> to vector<16x128xf32>
    %29 = vector.shape_cast %26 : vector<16x128xf32> to vector<1x16x128xf32>
    tpu.vector_store %arg5[%c0_25, %c64, %c0_26], %29 {strides = array<i32>} : memref<2x128x128xf32, #tpu.memory_space<vmem>>, vector<1x16x128xf32>,
    %c0_27 = arith.constant 0 : index
    %c2_28 = arith.constant 2 : index
    %c8_29 = arith.constant 8 : index
    %c0_30 = arith.constant 0 : index
    %30 = vector.load %arg3[%c0_27, %c2_28, %c8_29, %c0_30] : memref<1x4x64x128xf32, #tpu.memory_space<vmem>>, vector<1x2x8x128xf32>
    %31 = vector.shape_cast %30 : vector<1x2x8x128xf32> to vector<2x8x128xf32>
    %32 = vector.shape_cast %31 : vector<2x8x128xf32> to vector<16x128xf32>
    %c0_31 = arith.constant 0 : index
    %c80 = arith.constant 80 : index
    %c0_32 = arith.constant 0 : index
    %33 = vector.load %arg5[%c0_31, %c80, %c0_32] : memref<2x128x128xf32, #tpu.memory_space<vmem>>, vector<1x16x128xf32>
    %34 = vector.shape_cast %33 : vector<1x16x128xf32> to vector<16x128xf32>
    %35 = vector.shape_cast %32 : vector<16x128xf32> to vector<1x16x128xf32>
    tpu.vector_store %arg5[%c0_31, %c80, %c0_32], %35 {strides = array<i32>} : memref<2x128x128xf32, #tpu.memory_space<vmem>>, vector<1x16x128xf32>,
    %c0_33 = arith.constant 0 : index
    %c2_34 = arith.constant 2 : index
    %c16_35 = arith.constant 16 : index
    %c0_36 = arith.constant 0 : index
    %36 = vector.load %arg3[%c0_33, %c2_34, %c16_35, %c0_36] : memref<1x4x64x128xf32, #tpu.memory_space<vmem>>, vector<1x2x8x128xf32>
    %37 = vector.shape_cast %36 : vector<1x2x8x128xf32> to vector<2x8x128xf32>
    %38 = vector.shape_cast %37 : vector<2x8x128xf32> to vector<16x128xf32>
    %c0_37 = arith.constant 0 : index
    %c96 = arith.constant 96 : index
    %c0_38 = arith.constant 0 : index
    %39 = vector.load %arg5[%c0_37, %c96, %c0_38] : memref<2x128x128xf32, #tpu.memory_space<vmem>>, vector<1x16x128xf32>
    %40 = vector.shape_cast %39 : vector<1x16x128xf32> to vector<16x128xf32>
    %41 = vector.shape_cast %38 : vector<16x128xf32> to vector<1x16x128xf32>
    tpu.vector_store %arg5[%c0_37, %c96, %c0_38], %41 {strides = array<i32>} : memref<2x128x128xf32, #tpu.memory_space<vmem>>, vector<1x16x128xf32>,
    %c0_39 = arith.constant 0 : index
    %c2_40 = arith.constant 2 : index
    %c24_41 = arith.constant 24 : index
    %c0_42 = arith.constant 0 : index
    %42 = vector.load %arg3[%c0_39, %c2_40, %c24_41, %c0_42] : memref<1x4x64x128xf32, #tpu.memory_space<vmem>>, vector<1x2x8x128xf32>
    %43 = vector.shape_cast %42 : vector<1x2x8x128xf32> to vector<2x8x128xf32>
    %44 = vector.shape_cast %43 : vector<2x8x128xf32> to vector<16x128xf32>
    %c0_43 = arith.constant 0 : index
    %c112 = arith.constant 112 : index
    %c0_44 = arith.constant 0 : index
    %45 = vector.load %arg5[%c0_43, %c112, %c0_44] : memref<2x128x128xf32, #tpu.memory_space<vmem>>, vector<1x16x128xf32>
    %46 = vector.shape_cast %45 : vector<1x16x128xf32> to vector<16x128xf32>
    %47 = vector.shape_cast %44 : vector<16x128xf32> to vector<1x16x128xf32>
    tpu.vector_store %arg5[%c0_43, %c112, %c0_44], %47 {strides = array<i32>} : memref<2x128x128xf32, #tpu.memory_space<vmem>>, vector<1x16x128xf32>,
    %c0_45 = arith.constant 0 : index
    %c0_46 = arith.constant 0 : index
    %c32_47 = arith.constant 32 : index
    %c0_48 = arith.constant 0 : index
    %48 = vector.load %arg3[%c0_45, %c0_46, %c32_47, %c0_48] : memref<1x4x64x128xf32, #tpu.memory_space<vmem>>, vector<1x2x8x128xf32>
    %49 = vector.shape_cast %48 : vector<1x2x8x128xf32> to vector<2x8x128xf32>
    %50 = vector.shape_cast %49 : vector<2x8x128xf32> to vector<16x128xf32>
    %c1 = arith.constant 1 : index
    %c0_49 = arith.constant 0 : index
    %c0_50 = arith.constant 0 : index
    %51 = vector.load %arg5[%c1, %c0_49, %c0_50] : memref<2x128x128xf32, #tpu.memory_space<vmem>>, vector<1x16x128xf32>
    %52 = vector.shape_cast %51 : vector<1x16x128xf32> to vector<16x128xf32>
    %53 = vector.shape_cast %50 : vector<16x128xf32> to vector<1x16x128xf32>
    tpu.vector_store %arg5[%c1, %c0_49, %c0_50], %53 {strides = array<i32>} : memref<2x128x128xf32, #tpu.memory_space<vmem>>, vector<1x16x128xf32>,
    %c0_51 = arith.constant 0 : index
    %c0_52 = arith.constant 0 : index
    %c40 = arith.constant 40 : index
    %c0_53 = arith.constant 0 : index
    %54 = vector.load %arg3[%c0_51, %c0_52, %c40, %c0_53] : memref<1x4x64x128xf32, #tpu.memory_space<vmem>>, vector<1x2x8x128xf32>
    %55 = vector.shape_cast %54 : vector<1x2x8x128xf32> to vector<2x8x128xf32>
    %56 = vector.shape_cast %55 : vector<2x8x128xf32> to vector<16x128xf32>
    %c1_54 = arith.constant 1 : index
    %c16_55 = arith.constant 16 : index
    %c0_56 = arith.constant 0 : index
    %57 = vector.load %arg5[%c1_54, %c16_55, %c0_56] : memref<2x128x128xf32, #tpu.memory_space<vmem>>, vector<1x16x128xf32>
    %58 = vector.shape_cast %57 : vector<1x16x128xf32> to vector<16x128xf32>
    %59 = vector.shape_cast %56 : vector<16x128xf32> to vector<1x16x128xf32>
    tpu.vector_store %arg5[%c1_54, %c16_55, %c0_56], %59 {strides = array<i32>} : memref<2x128x128xf32, #tpu.memory_space<vmem>>, vector<1x16x128xf32>,
    %c0_57 = arith.constant 0 : index
    %c0_58 = arith.constant 0 : index
    %c48_59 = arith.constant 48 : index
    %c0_60 = arith.constant 0 : index
    %60 = vector.load %arg3[%c0_57, %c0_58, %c48_59, %c0_60] : memref<1x4x64x128xf32, #tpu.memory_space<vmem>>, vector<1x2x8x128xf32>
    %61 = vector.shape_cast %60 : vector<1x2x8x128xf32> to vector<2x8x128xf32>
    %62 = vector.shape_cast %61 : vector<2x8x128xf32> to vector<16x128xf32>
    %c1_61 = arith.constant 1 : index
    %c32_62 = arith.constant 32 : index
    %c0_63 = arith.constant 0 : index
    %63 = vector.load %arg5[%c1_61, %c32_62, %c0_63] : memref<2x128x128xf32, #tpu.memory_space<vmem>>, vector<1x16x128xf32>
    %64 = vector.shape_cast %63 : vector<1x16x128xf32> to vector<16x128xf32>
    %65 = vector.shape_cast %62 : vector<16x128xf32> to vector<1x16x128xf32>
    tpu.vector_store %arg5[%c1_61, %c32_62, %c0_63], %65 {strides = array<i32>} : memref<2x128x128xf32, #tpu.memory_space<vmem>>, vector<1x16x128xf32>,
    %c0_64 = arith.constant 0 : index
    %c0_65 = arith.constant 0 : index
    %c56 = arith.constant 56 : index
    %c0_66 = arith.constant 0 : index
    %66 = vector.load %arg3[%c0_64, %c0_65, %c56, %c0_66] : memref<1x4x64x128xf32, #tpu.memory_space<vmem>>, vector<1x2x8x128xf32>
    %67 = vector.shape_cast %66 : vector<1x2x8x128xf32> to vector<2x8x128xf32>
    %68 = vector.shape_cast %67 : vector<2x8x128xf32> to vector<16x128xf32>
    %c1_67 = arith.constant 1 : index
    %c48_68 = arith.constant 48 : index
    %c0_69 = arith.constant 0 : index
    %69 = vector.load %arg5[%c1_67, %c48_68, %c0_69] : memref<2x128x128xf32, #tpu.memory_space<vmem>>, vector<1x16x128xf32>
    %70 = vector.shape_cast %69 : vector<1x16x128xf32> to vector<16x128xf32>
    %71 = vector.shape_cast %68 : vector<16x128xf32> to vector<1x16x128xf32>
    tpu.vector_store %arg5[%c1_67, %c48_68, %c0_69], %71 {strides = array<i32>} : memref<2x128x128xf32, #tpu.memory_space<vmem>>, vector<1x16x128xf32>,
    %c0_70 = arith.constant 0 : index
    %c2_71 = arith.constant 2 : index
    %c32_72 = arith.constant 32 : index
    %c0_73 = arith.constant 0 : index
    %72 = vector.load %arg3[%c0_70, %c2_71, %c32_72, %c0_73] : memref<1x4x64x128xf32, #tpu.memory_space<vmem>>, vector<1x2x8x128xf32>
    %73 = vector.shape_cast %72 : vector<1x2x8x128xf32> to vector<2x8x128xf32>
    %74 = vector.shape_cast %73 : vector<2x8x128xf32> to vector<16x128xf32>
    %c1_74 = arith.constant 1 : index
    %c64_75 = arith.constant 64 : index
    %c0_76 = arith.constant 0 : index
    %75 = vector.load %arg5[%c1_74, %c64_75, %c0_76] : memref<2x128x128xf32, #tpu.memory_space<vmem>>, vector<1x16x128xf32>
    %76 = vector.shape_cast %75 : vector<1x16x128xf32> to vector<16x128xf32>
    %77 = vector.shape_cast %74 : vector<16x128xf32> to vector<1x16x128xf32>
    tpu.vector_store %arg5[%c1_74, %c64_75, %c0_76], %77 {strides = array<i32>} : memref<2x128x128xf32, #tpu.memory_space<vmem>>, vector<1x16x128xf32>,
    %c0_77 = arith.constant 0 : index
    %c2_78 = arith.constant 2 : index
    %c40_79 = arith.constant 40 : index
    %c0_80 = arith.constant 0 : index
    %78 = vector.load %arg3[%c0_77, %c2_78, %c40_79, %c0_80] : memref<1x4x64x128xf32, #tpu.memory_space<vmem>>, vector<1x2x8x128xf32>
    %79 = vector.shape_cast %78 : vector<1x2x8x128xf32> to vector<2x8x128xf32>
    %80 = vector.shape_cast %79 : vector<2x8x128xf32> to vector<16x128xf32>
    %c1_81 = arith.constant 1 : index
    %c80_82 = arith.constant 80 : index
    %c0_83 = arith.constant 0 : index
    %81 = vector.load %arg5[%c1_81, %c80_82, %c0_83] : memref<2x128x128xf32, #tpu.memory_space<vmem>>, vector<1x16x128xf32>
    %82 = vector.shape_cast %81 : vector<1x16x128xf32> to vector<16x128xf32>
    %83 = vector.shape_cast %80 : vector<16x128xf32> to vector<1x16x128xf32>
    tpu.vector_store %arg5[%c1_81, %c80_82, %c0_83], %83 {strides = array<i32>} : memref<2x128x128xf32, #tpu.memory_space<vmem>>, vector<1x16x128xf32>,
    %c0_84 = arith.constant 0 : index
    %c2_85 = arith.constant 2 : index
    %c48_86 = arith.constant 48 : index
    %c0_87 = arith.constant 0 : index
    %84 = vector.load %arg3[%c0_84, %c2_85, %c48_86, %c0_87] : memref<1x4x64x128xf32, #tpu.memory_space<vmem>>, vector<1x2x8x128xf32>
    %85 = vector.shape_cast %84 : vector<1x2x8x128xf32> to vector<2x8x128xf32>
    %86 = vector.shape_cast %85 : vector<2x8x128xf32> to vector<16x128xf32>
    %c1_88 = arith.constant 1 : index
    %c96_89 = arith.constant 96 : index
    %c0_90 = arith.constant 0 : index
    %87 = vector.load %arg5[%c1_88, %c96_89, %c0_90] : memref<2x128x128xf32, #tpu.memory_space<vmem>>, vector<1x16x128xf32>
    %88 = vector.shape_cast %87 : vector<1x16x128xf32> to vector<16x128xf32>
    %89 = vector.shape_cast %86 : vector<16x128xf32> to vector<1x16x128xf32>
    tpu.vector_store %arg5[%c1_88, %c96_89, %c0_90], %89 {strides = array<i32>} : memref<2x128x128xf32, #tpu.memory_space<vmem>>, vector<1x16x128xf32>,
    %c0_91 = arith.constant 0 : index
    %c2_92 = arith.constant 2 : index
    %c56_93 = arith.constant 56 : index
    %c0_94 = arith.constant 0 : index
    %90 = vector.load %arg3[%c0_91, %c2_92, %c56_93, %c0_94] : memref<1x4x64x128xf32, #tpu.memory_space<vmem>>, vector<1x2x8x128xf32>
    %91 = vector.shape_cast %90 : vector<1x2x8x128xf32> to vector<2x8x128xf32>
    %92 = vector.shape_cast %91 : vector<2x8x128xf32> to vector<16x128xf32>
    %c1_95 = arith.constant 1 : index
    %c112_96 = arith.constant 112 : index
    %c0_97 = arith.constant 0 : index
    %93 = vector.load %arg5[%c1_95, %c112_96, %c0_97] : memref<2x128x128xf32, #tpu.memory_space<vmem>>, vector<1x16x128xf32>
    %94 = vector.shape_cast %93 : vector<1x16x128xf32> to vector<16x128xf32>
    %95 = vector.shape_cast %92 : vector<16x128xf32> to vector<1x16x128xf32>
    tpu.vector_store %arg5[%c1_95, %c112_96, %c0_97], %95 {strides = array<i32>} : memref<2x128x128xf32, #tpu.memory_space<vmem>>, vector<1x16x128xf32>,
    %c0_98 = arith.constant 0 : index
    %c0_99 = arith.constant 0 : index
    %c0_100 = arith.constant 0 : index
    %96 = vector.load %arg5[%c0_98, %c0_99, %c0_100] : memref<2x128x128xf32, #tpu.memory_space<vmem>>, vector<1x128x128xf32>
    %97 = vector.shape_cast %96 : vector<1x128x128xf32> to vector<128x128xf32>
    %98 = tpu.transpose %97, [1, 0] : vector<128x128xf32> -> vector<128x128xf32>
    %c0_101 = arith.constant 0 : index
    %c0_102 = arith.constant 0 : index
    %c0_103 = arith.constant 0 : index
    %99 = vector.load %arg4[%c0_101, %c0_102, %c0_103] : memref<1x128x256xf32, #tpu.memory_space<vmem>>, vector<1x128x128xf32>
    %100 = vector.shape_cast %99 : vector<1x128x128xf32> to vector<128x128xf32>
    %101 = vector.shape_cast %98 : vector<128x128xf32> to vector<1x128x128xf32>
    tpu.vector_store %arg4[%c0_101, %c0_102, %c0_103], %101 {strides = array<i32>} : memref<1x128x256xf32, #tpu.memory_space<vmem>>, vector<1x128x128xf32>,
    %c1_104 = arith.constant 1 : index
    %c0_105 = arith.constant 0 : index
    %c0_106 = arith.constant 0 : index
    %102 = vector.load %arg5[%c1_104, %c0_105, %c0_106] : memref<2x128x128xf32, #tpu.memory_space<vmem>>, vector<1x128x128xf32>
    %103 = vector.shape_cast %102 : vector<1x128x128xf32> to vector<128x128xf32>
    %104 = tpu.transpose %103, [1, 0] : vector<128x128xf32> -> vector<128x128xf32>
    %c0_107 = arith.constant 0 : index
    %c0_108 = arith.constant 0 : index
    %c128 = arith.constant 128 : index
    %105 = vector.load %arg4[%c0_107, %c0_108, %c128] : memref<1x128x256xf32, #tpu.memory_space<vmem>>, vector<1x128x128xf32>
    %106 = vector.shape_cast %105 : vector<1x128x128xf32> to vector<128x128xf32>
    %107 = vector.shape_cast %104 : vector<128x128xf32> to vector<1x128x128xf32>
    tpu.vector_store %arg4[%c0_107, %c0_108, %c128], %107 {strides = array<i32>} : memref<1x128x256xf32, #tpu.memory_space<vmem>>, vector<1x128x128xf32>,
    return
  }
  func.func @transform_0(%arg0: i32, %arg1: i32, %arg2: i32) -> (i32, i32, i32, i32) {
    %c0_i32 = arith.constant 0 : i32
    %c0_i32_0 = arith.constant 0 : i32
    return %arg0, %arg2, %c0_i32, %arg1 : i32, i32, i32, i32
  }
  func.func @transform_1(%arg0: i32, %arg1: i32, %arg2: i32) -> (i32, i32, i32) {
    %c0_i32 = arith.constant 0 : i32
    return %arg0, %arg1, %arg2 : i32, i32, i32
  }
}

</mosaic_0001>

<bundles_post_ra>
// kernel: tpu_custom_call.1
= control target key start
LH: loop header
LB: loop body
LE: loop exit
PB: predicated region body
PF: predicated region fallthrough
CT: control target
= control target key end

     0   :  { %6 = vsyncpa [#allocation4], 0  ;;  %s960_s0 = inlined_call_operand.hbm [shape: f32[2,8,64,128], index: 0, kind: input, shape index: {}]   ;;  %s961_s1 = inlined_call_operand.hbm [shape: f32[2,128,512], index: 1, kind: output, shape index: {}]  }
   0x1   :  { %8 = vsyncpa [#allocation4 + $0x1], 0 }
   0x2   :  { %9 = vsyncpa [#allocation5], 0 }
   0x3   :  { %11 = vsyncpa [#allocation5 + $0x1], 0  ;;  %s745_s6 = smov 0   ;;  %s747_s7 = smov 0  }
   0x4   :  { %s749_s8 = smov 0   ;;  %s751_s9 = smov 0  }
   0x5   :  { %s753_s10 = smov 0   ;;  %s755_s11 = smov 0  }
   0x6   :  { %s757_s12 = smov 0   ;;  %s759_s13 = smov 0  }
   0x7 LB: > { %s482_s14 = sadd.s32 4294967295, %s728_s13   ;;  %s483_s15 = sadd.s32 4294967294, %s728_s13   ;;  %s728_s13 = sphi %s759_s13, %s17_s13   ;;  %s724_s12 = sphi %s757_s12, %s975_s12   ;;  %s720_s11 = sphi %s755_s11, %s974_s11   ;;  %s716_s10 = sphi %s753_s10, %s973_s10   ;;  %s712_s9 = sphi %s751_s9, %s972_s9   ;;  %s708_s8 = sphi %s749_s8, %s971_s8   ;;  %s704_s7 = sphi %s747_s7, %s970_s7   ;;  %s700_s6 = sphi %s745_s6, %s969_s6  }
   0x8   : > { %s29_s16 = sadd.s32 1, %s720_s11  ;;  %s36_s17 = sadd.s32 1, %s724_s12 }
   0x9   : > { %p30_p0 = scmp.ge.s32.totalorder %s29_s16, 2  ;;  %s47_s18 = sadd.s32 1, %s708_s8 }
   0xa   : > { %p54_p1 = scmp.ne.s32.totalorder %s708_s8, %s704_s7  ;;  %p55_p2 = scmp.eq.s32.totalorder %s728_s13, 0 }
   0xb   : > { %s977_s16 = smov (%p30_p0, %s29_s16), 0  ;;  %s979_s17 = smov (!%p30_p0, %s36_s17), %s724_s12 }
   0xc   : > { %s41_s19 = ssub.s32 %s720_s11, %s977_s16  ;;  %p798_p3 = por %p55_p2, %p54_p1 }
   0xd   : > { %p38_p4 = scmp.ge.s32.totalorder %s979_s17, 2  ;;  %p60_p5 = scmp.ne.s32.totalorder %s704_s7, %s700_s6 }
   0xe   : > { %p61_p6 = scmp.eq.s32.totalorder %s482_s14, 0  ;;  %p88_p7 = scmp.eq.s32.totalorder %s482_s14, 3 }
   0xf   : > { %s981_s17 = smov (%p38_p4, %s979_s17), 0  ;;  %p94_p10 = scmp.eq.s32.totalorder %s483_s15, 3 }
  0x10   : > { %964 = sst [smem:[#allocation9_spill]] %s981_s17  ;;  %p806_p8 = por %p61_p6, %p60_p5 }
  0x11   : > { %p810_p9 = por %p88_p7, %p54_p1  ;;  %s40_s23 = ssub.s32 %s724_s12, %s981_s17 }
  0x12   : > { %s42_s24 = sor.u32 %s41_s19, %s40_s23  ;;  %p816_p12 = por %p94_p10, %p60_p5 }
  0x13   : > { %p45_p11 = scmp.eq.s32.totalorder %s42_s24, 0  ;;  %p529_p13 = scmp.lt.s32.totalorder %s728_s13, 4 }
  0x14   : > { %s114_s26 = sand.u32 1, %s708_s8   ;;  %s516_s29 = sshll.u32 %s720_s11, 5 }
  0x15   : > { %s823_s27 = scalar_select %p45_p11, %s708_s8, %s47_s18  }
  0x16   : > { %s486_s28 = sshll.u32 %s114_s26, 8  ;;  %s489_s30 = sshll.u32 %s724_s12, 6 }
  0x17   : > { %s118_s2 = scalar_lea.vmem [#allocation3], %s486_s28  ;;  %s125_s4 = sadd.s32 %s516_s29, %s489_s30 }
  0x18   : > { %s130_s3 = sshll.u32 %s118_s2, 4  ;;  %s490_s5 = sshll.u32 %s125_s4, 3  ;;  %s131_s3 = int_to_ptr.vmem [resolvable:$true] %s130_s3 }
  0x19   : > { %p522_p0 = pnand %p529_p13, %p798_p3  ;;  %s127_s19 = scalar_lea.hbm %s960_s0, %s490_s5 }
  0x1a   : > { %s128_s23 = sshll.u32 %s127_s19, 4  ;;  %s115_s18 = scalar_lea.sflag [#allocation4], %s114_s26  ;;  %s129_s23 = int_to_ptr.hbm [resolvable:$true] %s128_s23 }
  0x1b   : > { %s730_s24 = smov 128   ;;  %s731_s17 = smov 8  }
  0x1c   : > { %524 = dma.hbm_to_vmem [thread:$0]  (!%p522_p0), %s129_s23, 4096, %s131_s3, %s115_s18, %s730_s24, %s730_s24, %s731_s17  }
  0x1d   : > { %p491_p1 = scmp.ge.s32.totalorder %s728_s13, 1  ;;  %p138_p2 = scmp.lt.s32.totalorder %s728_s13, 5 }
  0x1f   : > { %p139_p4 = pnand %p491_p1, %p138_p2 }
  0x20   : > { %s835_s28 = sand.u32 (!%p139_p4), 1, %s704_s7  }
  0x21   : > { %142 = sbr.rel (%p139_p4) target bundleno = 331 (0x14b), region = 24  ;;  %s492_s20 = sshll.u32 (!%p139_p4), %s835_s28, 8 }
  0x22   : > { %s145_s29 = scalar_lea.sflag (!%p139_p4), [#allocation4], %s835_s28  ;;  %s841_s30 = scalar_lea.vmem (!%p139_p4), [#allocation3], %s492_s20 }
  0x26   : > { %691 = dma.done.wait (%p806_p8), %s145_s29, 4096  }
  0x27   : > { %693 = vsyncadd (%p806_p8), %s145_s29, 4294963200  ;;  %v204_v0 = vld [vmem:[%s841_s30 + $0x20] sm:$0xff]  ;;  %v209_v4 = vld [vmem:[%s841_s30 + $0x28] sm:$0xff]  ;;  %s881_s17 = scalar_lea.vmem [#allocation6], %s492_s20  ;;  %s511_s21 = sshll.u32 %s712_s9, 1 }
  0x28   : > { %v171_v1 = vld [vmem:[%s841_s30] sm:$0xff]  ;;  %317 = vxpose.xlu1.b32.start [1/16] %v204_v0, 128  ;;  %v175_v5 = vld [vmem:[%s841_s30 + $0x8] sm:$0xff]  ;;  %v213_v8 = vld [vmem:[%s841_s30 + $0x30] sm:$0xff]  ;;  %s512_s26 = sshll.u32 %s716_s10, 6  ;;  %s383_s15 = sshll.u32 %s881_s17, 4  ;;  %s384_s15 = int_to_ptr.vmem [resolvable:$true] %s383_s15 }
  0x29   : > { %253 = vxpose.xlu0.b32.start [1/16] %v171_v1, 128  ;;  %v205_v2 = vld [vmem:[%s841_s30 + $0x60] sm:$0xff]  ;;  %v210_v6 = vld [vmem:[%s841_s30 + $0x68] sm:$0xff]  ;;  %v179_v9 = vld [vmem:[%s841_s30 + $0x10] sm:$0xff]  ;;  %s380_s2 = sadd.s32 %s512_s26, %s511_s21  ;;  %s366_s9 = scalar_lea.sflag [#allocation5], %s835_s28 }
  0x2a   : > { %v172_v3 = vld [vmem:[%s841_s30 + $0x40] sm:$0xff]  ;;  %v176_v7 = vld [vmem:[%s841_s30 + $0x48] sm:$0xff]  ;;  %v214_v10 = vld [vmem:[%s841_s30 + $0x70] sm:$0xff]  ;;  %s513_s3 = sshll.u32 %s380_s2, 3  ;;  %s650_s20 = scalar_lea.hbm %s961_s1, 1024 }
  0x2b   : > { %v180_v11 = vld [vmem:[%s841_s30 + $0x50] sm:$0xff]  ;;  %v217_v12 = vld [vmem:[%s841_s30 + $0x38] sm:$0xff]  ;;  %v502_v16 = vld [vmem:[%s841_s30 + $0xa0] sm:$0xff]  ;;  %s382_s14 = scalar_lea.hbm %s961_s1, %s513_s3 }
  0x2c   : > { %v183_v13 = vld [vmem:[%s841_s30 + $0x18] sm:$0xff]  ;;  %v494_v17 = vld [vmem:[%s841_s30 + $0x80] sm:$0xff]  ;;  %v504_v20 = vld [vmem:[%s841_s30 + $0xa8] sm:$0xff]  ;;  %s385_s19 = sshll.u32 %s382_s14, 4  ;;  %s386_s19 = int_to_ptr.hbm [resolvable:$true] %s385_s19 }
  0x2d   : > { %v218_v14 = vld [vmem:[%s841_s30 + $0x78] sm:$0xff]  ;;  %v503_v18 = vld [vmem:[%s841_s30 + $0xe0] sm:$0xff]  ;;  %v496_v21 = vld [vmem:[%s841_s30 + $0x88] sm:$0xff]  ;;  %s644_s10 = sshra.s32 %s386_s19, 4  ;;  %s645_s10 = int_to_ptr.hbm [resolvable:$true] %s644_s10 }
  0x2e   : > { %v184_v15 = vld [vmem:[%s841_s30 + $0x58] sm:$0xff]  ;;  %v495_v19 = vld [vmem:[%s841_s30 + $0xc0] sm:$0xff]  ;;  %v505_v22 = vld [vmem:[%s841_s30 + $0xe8] sm:$0xff]  ;;  %s646_s23 = scalar_lea.hbm %s645_s10, 256  ;;  %p651_p7 = scmp.lt.s32.totalorder %s645_s10, %s961_s1 }
  0x2f   : > { %v497_v23 = vld [vmem:[%s841_s30 + $0xc8] sm:$0xff]  ;;  %v506_v24 = vld [vmem:[%s841_s30 + $0xb0] sm:$0xff]  ;;  %v508_v28 = vld [vmem:[%s841_s30 + $0xb8] sm:$0xff]  ;;  %p647_p3 = scmp.ne.s32.totalorder %s645_s10, %s646_s23  ;;  %p652_p8 = scmp.lt.s32.totalorder %s650_s20, %s646_s23 }
  0x30   : > { %318 = vxpose.xlu1.b32.cont [2/16] %v205_v2, 128  ;;  %v498_v25 = vld [vmem:[%s841_s30 + $0x90] sm:$0xff]  ;;  %v500_v29 = vld [vmem:[%s841_s30 + $0x98] sm:$0xff] }
  0x31   : > { %254 = vxpose.xlu0.b32.cont [2/16] %v172_v3, 128  ;;  %v507_v26 = vld [vmem:[%s841_s30 + $0xf0] sm:$0xff]  ;;  %v509_v30 = vld [vmem:[%s841_s30 + $0xf8] sm:$0xff]  ;;  %p648_p5 = pnand %p647_p3, %p810_p9  ;;  %p653_p10 = por %p652_p8, %p651_p7 }
  0x32   : > { %v499_v27 = vld [vmem:[%s841_s30 + $0xd0] sm:$0xff]  ;;  %v501_v31 = vld [vmem:[%s841_s30 + $0xd8] sm:$0xff] }
  0x33   : > { %p649_p6 = pneg %p648_p5 }
  0x35   : > { %p654_p11 = pnand %p653_p10, %p649_p6 }
  0x38   : > { %319 = vxpose.xlu1.b32.cont [3/16] %v209_v4, 128 }
  0x39   : > { %255 = vxpose.xlu0.b32.cont [3/16] %v175_v5, 128 }
  0x40   : > { %320 = vxpose.xlu1.b32.cont [4/16] %v210_v6, 128 }
  0x41   : > { %256 = vxpose.xlu0.b32.cont [4/16] %v176_v7, 128 }
  0x48   : > { %321 = vxpose.xlu1.b32.cont [5/16] %v213_v8, 128 }
  0x49   : > { %257 = vxpose.xlu0.b32.cont [5/16] %v179_v9, 128 }
  0x50   : > { %322 = vxpose.xlu1.b32.cont [6/16] %v214_v10, 128 }
  0x51   : > { %258 = vxpose.xlu0.b32.cont [6/16] %v180_v11, 128 }
  0x58   : > { %323 = vxpose.xlu1.b32.cont [7/16] %v217_v12, 128 }
  0x59   : > { %259 = vxpose.xlu0.b32.cont [7/16] %v183_v13, 128 }
  0x60   : > { %324 = vxpose.xlu1.b32.cont [8/16] %v218_v14, 128 }
  0x61   : > { %260 = vxpose.xlu0.b32.cont [8/16] %v184_v15, 128 }
  0x68   : > { %325 = vxpose.xlu1.b32.cont [9/16] %v502_v16, 128 }
  0x69   : > { %261 = vxpose.xlu0.b32.cont [9/16] %v494_v17, 128 }
  0x70   : > { %326 = vxpose.xlu1.b32.cont [10/16] %v503_v18, 128 }
  0x71   : > { %262 = vxpose.xlu0.b32.cont [10/16] %v495_v19, 128 }
  0x78   : > { %327 = vxpose.xlu1.b32.cont [11/16] %v504_v20, 128 }
  0x79   : > { %263 = vxpose.xlu0.b32.cont [11/16] %v496_v21, 128 }
  0x80   : > { %328 = vxpose.xlu1.b32.cont [12/16] %v505_v22, 128 }
  0x81   : > { %264 = vxpose.xlu0.b32.cont [12/16] %v497_v23, 128 }
  0x88   : > { %329 = vxpose.xlu1.b32.cont [13/16] %v506_v24, 128 }
  0x89   : > { %265 = vxpose.xlu0.b32.cont [13/16] %v498_v25, 128 }
  0x90   : > { %330 = vxpose.xlu1.b32.cont [14/16] %v507_v26, 128 }
  0x91   : > { %266 = vxpose.xlu0.b32.cont [14/16] %v499_v27, 128 }
  0x98   : > { %331 = vxpose.xlu1.b32.cont [15/16] %v508_v28, 128 }
  0x99   : > { %267 = vxpose.xlu0.b32.cont [15/16] %v500_v29, 128 }
  0xa0   : > { %332 = vxpose.xlu1.b32.end [16/16] %v509_v30, 128 }
  0xa1   : > { %268 = vxpose.xlu0.b32.end [16/16] %v501_v31, 128 }
  0xcc   : > { %v333_v32 = vpop.trf.xlu1 }
  0xcd   : > { %v269_v33 = vpop.trf.xlu0  ;;  %349 = vst [vmem:[%s881_s17 + $0x8] sm:$0xff] %v333_v32 }
  0xce   : > { %285 = vst [vmem:[%s881_s17] sm:$0xff] %v269_v33 }
  0xd4   : > { %v334_v34 = vpop.trf.xlu1 }
  0xd5   : > { %v270_v35 = vpop.trf.xlu0  ;;  %350 = vst [vmem:[%s881_s17 + $0x18] sm:$0xff] %v334_v34 }
  0xd6   : > { %286 = vst [vmem:[%s881_s17 + $0x10] sm:$0xff] %v270_v35 }
  0xdc   : > { %v335_v36 = vpop.trf.xlu1 }
  0xdd   : > { %v271_v37 = vpop.trf.xlu0  ;;  %351 = vst [vmem:[%s881_s17 + $0x28] sm:$0xff] %v335_v36 }
  0xde   : > { %287 = vst [vmem:[%s881_s17 + $0x20] sm:$0xff] %v271_v37 }
  0xe4   : > { %v336_v38 = vpop.trf.xlu1 }
  0xe5   : > { %v272_v39 = vpop.trf.xlu0  ;;  %352 = vst [vmem:[%s881_s17 + $0x38] sm:$0xff] %v336_v38 }
  0xe6   : > { %288 = vst [vmem:[%s881_s17 + $0x30] sm:$0xff] %v272_v39 }
  0xec   : > { %v337_v40 = vpop.trf.xlu1 }
  0xed   : > { %v273_v41 = vpop.trf.xlu0  ;;  %353 = vst [vmem:[%s881_s17 + $0x48] sm:$0xff] %v337_v40 }
  0xee   : > { %289 = vst [vmem:[%s881_s17 + $0x40] sm:$0xff] %v273_v41 }
  0xf4   : > { %v338_v42 = vpop.trf.xlu1 }
  0xf5   : > { %v274_v43 = vpop.trf.xlu0  ;;  %354 = vst [vmem:[%s881_s17 + $0x58] sm:$0xff] %v338_v42 }
  0xf6   : > { %290 = vst [vmem:[%s881_s17 + $0x50] sm:$0xff] %v274_v43 }
  0xfc   : > { %v339_v44 = vpop.trf.xlu1 }
  0xfd   : > { %v275_v45 = vpop.trf.xlu0  ;;  %355 = vst [vmem:[%s881_s17 + $0x68] sm:$0xff] %v339_v44 }
  0xfe   : > { %291 = vst [vmem:[%s881_s17 + $0x60] sm:$0xff] %v275_v45 }
 0x104   : > { %v340_v46 = vpop.trf.xlu1 }
 0x105   : > { %v276_v47 = vpop.trf.xlu0  ;;  %356 = vst [vmem:[%s881_s17 + $0x78] sm:$0xff] %v340_v46 }
 0x106   : > { %292 = vst [vmem:[%s881_s17 + $0x70] sm:$0xff] %v276_v47 }
 0x10c   : > { %v341_v48 = vpop.trf.xlu1 }
 0x10d   : > { %v277_v49 = vpop.trf.xlu0  ;;  %357 = vst [vmem:[%s881_s17 + $0x88] sm:$0xff] %v341_v48 }
 0x10e   : > { %293 = vst [vmem:[%s881_s17 + $0x80] sm:$0xff] %v277_v49 }
 0x114   : > { %v342_v50 = vpop.trf.xlu1 }
 0x115   : > { %v278_v51 = vpop.trf.xlu0  ;;  %358 = vst [vmem:[%s881_s17 + $0x98] sm:$0xff] %v342_v50 }
 0x116   : > { %294 = vst [vmem:[%s881_s17 + $0x90] sm:$0xff] %v278_v51 }
 0x11c   : > { %v343_v52 = vpop.trf.xlu1 }
 0x11d   : > { %v279_v53 = vpop.trf.xlu0  ;;  %359 = vst [vmem:[%s881_s17 + $0xa8] sm:$0xff] %v343_v52 }
 0x11e   : > { %295 = vst [vmem:[%s881_s17 + $0xa0] sm:$0xff] %v279_v53 }
 0x124   : > { %v344_v54 = vpop.trf.xlu1 }
 0x125   : > { %v280_v55 = vpop.trf.xlu0  ;;  %360 = vst [vmem:[%s881_s17 + $0xb8] sm:$0xff] %v344_v54 }
 0x126   : > { %296 = vst [vmem:[%s881_s17 + $0xb0] sm:$0xff] %v280_v55 }
 0x12c   : > { %v345_v56 = vpop.trf.xlu1 }
 0x12d   : > { %v281_v57 = vpop.trf.xlu0  ;;  %361 = vst [vmem:[%s881_s17 + $0xc8] sm:$0xff] %v345_v56 }
 0x12e   : > { %297 = vst [vmem:[%s881_s17 + $0xc0] sm:$0xff] %v281_v57 }
 0x134   : > { %v346_v58 = vpop.trf.xlu1 }
 0x135   : > { %v282_v59 = vpop.trf.xlu0  ;;  %362 = vst [vmem:[%s881_s17 + $0xd8] sm:$0xff] %v346_v58 }
 0x136   : > { %298 = vst [vmem:[%s881_s17 + $0xd0] sm:$0xff] %v282_v59 }
 0x13c   : > { %v347_v60 = vpop.trf.xlu1 }
 0x13d   : > { %v283_v61 = vpop.trf.xlu0  ;;  %363 = vst [vmem:[%s881_s17 + $0xe8] sm:$0xff] %v347_v60 }
 0x13e   : > { %299 = vst [vmem:[%s881_s17 + $0xe0] sm:$0xff] %v283_v61 }
 0x144   : > { %v348_v62 = vpop.trf.xlu1 }
 0x145   : > { %v284_v63 = vpop.trf.xlu0  ;;  %364 = vst [vmem:[%s881_s17 + $0xf8] sm:$0xff] %v348_v62 }
 0x146   : > { %300 = vst [vmem:[%s881_s17 + $0xf0] sm:$0xff] %v284_v63 }
 0x147   : > { %657 = shalt.err (!%p654_p11)
}
 0x148   : > { %s732_s28 = smov 256   ;;  %s733_s17 = smov 512  }
 0x149   : > { %s734_s21 = smov 16  }
 0x14a   : > { %519 = dma.vmem_to_hbm [thread:$0]  (%p810_p9), %s384_s15, 4096, %s386_s19, %s366_s9, %s732_s28, %s733_s17, %s734_s21  }
 0x14b PF: > { %p530_p13 = scmp.ge.s32.totalorder %s728_s13, 2  ;;  %s400_s26 = sand.u32 1, %s700_s6  }
 0x14c   : > { %s401_s2 = scalar_lea.sflag [#allocation5], %s400_s26 }
 0x14d   : > { %p526_p0 = pnand %p530_p13, %p816_p12 }
 0x14f   : > { %p527_p1 = pneg %p526_p0 }
 0x151   : > { %695 = dma.done.wait (%p527_p1), %s401_s2, 4096  }
 0x152   : > { %697 = vsyncadd (%p527_p1), %s401_s2, 4294963200  ;;  %s17_s13 = sadd.s32 1, %s728_s13   ;;  %s968_s22 = sld [smem:[#allocation9_spill]] }
 0x153   : > { %p14_p2 = scmp.ge.s32.totalorder %s17_s13, 6   ;;  %s969_s6 = smov %s704_s7 }
 0x154   : > { %s970_s7 = smov %s708_s8  ;;  %s971_s8 = smov %s823_s27 }
 0x155   : > { %s972_s9 = smov %s720_s11  ;;  %s973_s10 = smov %s724_s12 }
 0x156   : > { %s974_s11 = smov %s977_s16  ;;  %16 = sbr.rel (!%p14_p2) target bundleno = 7 (0x7), region = 71 }
 0x158   : > { %s975_s12 = smov %s968_s22 }
 0x15b   :  { %407 = vsyncpa [#allocation4], 1 }
 0x15c   :  { %409 = vsyncpa [#allocation4 + $0x1], 1 }
 0x15d   :  { %410 = vsyncpa [#allocation5], 1 }
 0x15e   :  { %412 = vsyncpa [#allocation5 + $0x1], 1 }

</bundles_post_ra>
